<compile_context>
chip_gen: v6e
topology: v6e:2x2x1
jax: 0.10.0
libtpu: 0.0.40
codegen_flags: <defaults>
</compile_context>

<pallas_src>
import functools

import jax
import jax.numpy as jnp
from jax.experimental import pallas as pl
from jax.experimental.pallas import tpu as pltpu


def _round_up(n, m):
    return ((n + m - 1) // m) * m


# ----------------------------------------------------------------------------
# Fold columns [0, width) of rows [r0, r0+rb) of the current tile into the
# lane-wide accumulators.  Full 128-lane chunks fold on the VPU; only a
# (<128)-wide tail (last spatial tile / tiny S) pays a cross-lane XLU reduce.
# ----------------------------------------------------------------------------
def _accum_rows(x_ref, m_acc, s_acc, r0, rb, width):
    rows = slice(r0, r0 + rb)
    n_chunks = width // 128

    if n_chunks > 0:
        m_p = x_ref[rows, 0:128]                 # native dtype; max is exact
        s_p = m_p.astype(jnp.float32)            # f32 sum accumulation
        for c in range(1, n_chunks):
            ch = x_ref[rows, c * 128:(c + 1) * 128]   # lane-aligned static slice
            m_p = jnp.maximum(m_p, ch)
            s_p = s_p + ch.astype(jnp.float32)
        m_acc[rows, :] = jnp.maximum(m_acc[rows, :], m_p.astype(jnp.float32))
        s_acc[rows, :] = s_acc[rows, :] + s_p

    tail_w = width - n_chunks * 128
    if tail_w > 0:
        tail = x_ref[rows, n_chunks * 128:width].astype(jnp.float32)
        # Broadcasting the (rb, 1) row-max across all 128 lanes is correct for
        # max; the row-sum of the tail goes into lane 0 only.
        m_acc[rows, :] = jnp.maximum(
            m_acc[rows, :], jnp.max(tail, axis=1, keepdims=True))
        s_acc[rows, :1] = s_acc[rows, :1] + jnp.sum(tail, axis=1, keepdims=True)


# ----------------------------------------------------------------------------
# Fused max + mean global pool kernel.
#   x_ref:   (TR, TS) tile of the (B*C, H*W) input
#   out_ref: (TR, 2)  pooled output (lane 0 = max, lane 1 = mean)
#   m_acc / s_acc: (TR, 128) VMEM lane-wide accumulators (persist over j axis)
# ----------------------------------------------------------------------------
def _concat_pool_kernel(x_ref, out_ref, m_acc, s_acc, *,
                        total_s, ts, n_full_tiles, rem_s, row_block):
    j = pl.program_id(1)
    nj = pl.num_programs(1)
    tr = x_ref.shape[0]

    @pl.when(j == 0)
    def _():
        m_acc[...] = jnp.full(m_acc.shape, -jnp.inf, m_acc.dtype)
        s_acc[...] = jnp.zeros(s_acc.shape, s_acc.dtype)

    def fold(width):
        for r0 in range(0, tr, row_block):
            rb = min(row_block, tr - r0)
            _accum_rows(x_ref, m_acc, s_acc, r0, rb, width)

    if rem_s == 0:
        # Every spatial tile is full width: no masking anywhere.
        fold(ts)
    else:
        if n_full_tiles > 0:
            @pl.when(j < n_full_tiles)
            def _():
                fold(ts)

        @pl.when(j == nj - 1)
        def _():
            fold(rem_s)               # static-slice remainder, last tile only

    @pl.when(j == nj - 1)
    def _():
        # Single cross-lane (XLU) reduce per row tile.
        mx = jnp.max(m_acc[...], axis=1, keepdims=True)        # (TR, 1)
        sm = jnp.sum(s_acc[...], axis=1, keepdims=True)        # (TR, 1)
        out_ref[:, 0:1] = mx.astype(out_ref.dtype)
        out_ref[:, 1:2] = (sm * (1.0 / total_s)).astype(out_ref.dtype)


# ----------------------------------------------------------------------------
# Wrapper: AdaptiveConcatPool2d forward.
# ----------------------------------------------------------------------------
def adaptive_concat_pool2d(x, *, max_spatial_tile=4096, max_row_tile=2048,
                           target_tile_bytes=4 << 20, row_block=64):
    """x: (B, C, H, W) -> (B, 2*C, 1, 1) == torch.cat([maxpool, avgpool], dim=1)."""
    B, C, H, W = x.shape
    R, S = B * C, H * W
    x2 = x.reshape(R, S)                  # free: NCHW is contiguous over (H, W)
    itemsize = jnp.dtype(x.dtype).itemsize

    # Spatial (lane) tile: full S if it fits, else a 128-multiple chunk.
    if S <= max_spatial_tile:
        TS = S
    else:
        TS = max(128, (max_spatial_tile // 128) * 128)
    grid_s = pl.cdiv(S, TS)
    n_full_tiles = S // TS                # number of full-width spatial tiles
    rem_s = S - n_full_tiles * TS         # width of trailing partial tile (0 if none)

    # Row (sublane) tile: multiple of 8, sized so a tile is ~target_tile_bytes,
    # but capped at ceil(R/2) so grid[0] >= 2 and both v7x TensorCores get work.
    if R <= 8:
        TR = R
    else:
        cap_bytes = max(8, (target_tile_bytes // max(TS * itemsize, 1)) // 8 * 8)
        cap_half = _round_up(-(-R // 2), 8)
        TR = max(8, min(cap_bytes, cap_half, max_row_tile))
    grid = (pl.cdiv(R, TR), grid_s)

    row_block = max(8, (row_block // 8) * 8)

    kernel = functools.partial(
        _concat_pool_kernel,
        total_s=S, ts=TS, n_full_tiles=n_full_tiles, rem_s=rem_s,
        row_block=row_block)

    pooled = pl.pallas_call(
        kernel,
        out_shape=jax.ShapeDtypeStruct((R, 2), x.dtype),
        grid=grid,
        in_specs=[pl.BlockSpec((TR, TS), lambda i, j: (i, j))],
        out_specs=pl.BlockSpec((TR, 2), lambda i, j: (i, 0)),
        scratch_shapes=[pltpu.VMEM((TR, 128), jnp.float32),
                        pltpu.VMEM((TR, 128), jnp.float32)],
        compiler_params=pltpu.CompilerParams(
            dimension_semantics=("parallel", "arbitrary")),
        cost_estimate=pl.CostEstimate(
            flops=2 * R * S, transcendentals=0,
            bytes_accessed=R * S * itemsize + 2 * R * itemsize),
    )(x2)

    # torch.cat([mp(x), ap(x)], dim=1): first C channels = max, next C = mean.
    mx = pooled[:, 0].reshape(B, C)
    av = pooled[:, 1].reshape(B, C)
    return jnp.concatenate([mx, av], axis=1).reshape(B, 2 * C, 1, 1)


# ----------------------------------------------------------------------------
# Pure-JAX reference.
# ----------------------------------------------------------------------------
def reference_forward(x):
    mx = jnp.max(x, axis=(2, 3))
    av = jnp.mean(x, axis=(2, 3))
    return jnp.concatenate([mx, av], axis=1)[:, :, None, None]


if __name__ == "__main__":
    key = jax.random.PRNGKey(0)

    # 1) Primary check: small canonical shape, single tile.
    B, C, H, W = 2, 4, 16, 16
    x = jax.random.normal(key, (B, C, H, W), jnp.float32)
    out = jax.block_until_ready(adaptive_concat_pool2d(x))
    ref = reference_forward(x)
    assert out.shape == (B, 2 * C, 1, 1), out.shape
    assert jnp.allclose(out, ref, atol=1e-5, rtol=1e-5), (
        float(jnp.max(jnp.abs(out - ref))))

    # 2) Force row tiling (R % TR != 0), spatial tiling and a <128-lane tail.
    x2 = jax.random.normal(jax.random.PRNGKey(1), (3, 5, 15, 13), jnp.float32)
    out2 = jax.block_until_ready(
        adaptive_concat_pool2d(x2, max_spatial_tile=128, max_row_tile=8,
                               row_block=8))
    ref2 = reference_forward(x2)
    assert out2.shape == (3, 10, 1, 1), out2.shape
    assert jnp.allclose(out2, ref2, atol=1e-5, rtol=1e-5), (
        float(jnp.max(jnp.abs(out2 - ref2))))

    # 3) Default params with S > max_spatial_tile (full + remainder spatial tiles).
    x3 = jax.random.normal(jax.random.PRNGKey(2), (1, 4, 80, 64), jnp.float32)
    out3 = jax.block_until_ready(adaptive_concat_pool2d(x3))
    ref3 = reference_forward(x3)
    assert out3.shape == (1, 8, 1, 1), out3.shape
    assert jnp.allclose(out3, ref3, atol=1e-5, rtol=1e-5), (
        float(jnp.max(jnp.abs(out3 - ref3))))

    print("KERNEL_OK")
</pallas_src>

<mosaic_0001>
module attributes {stable_mosaic.version = 11 : i64} {
  func.func @_concat_pool_kernel(%arg0: i32, %arg1: i32, %arg2: memref<8x256xf32, #tpu.memory_space<vmem>>, %arg3: memref<8x2xf32, #tpu.memory_space<vmem>>, %arg4: memref<8x128xf32, #tpu.memory_space<vmem>>, %arg5: memref<8x128xf32, #tpu.memory_space<vmem>>) attributes {dimension_semantics = [#tpu.dimension_semantics<parallel>, #tpu.dimension_semantics<arbitrary>], iteration_bounds = array<i64: 1, 1>, scalar_prefetch = 0 : i64, scratch_operands = 2 : i64, tpu.core_type = #tpu.core_type<tc>, window_params = [{transform_indices = @transform_0, window_bounds = array<i64: 8, 256>}, {transform_indices = @transform_1, window_bounds = array<i64: 8, 2>}]} {
    %c0_i32 = arith.constant 0 : i32
    %0 = arith.cmpi eq, %arg1, %c0_i32 : i32
    %1 = arith.extui %0 : i1 to i32
    %c0_i32_0 = arith.constant 0 : i32
    %2 = arith.cmpi ne, %1, %c0_i32_0 : i32
    scf.if %2 {
      %cst = arith.constant 0xFF800000 : f32
      %16 = vector.broadcast %cst : f32 to vector<8x128xf32>
      %c0_13 = arith.constant 0 : index
      %c0_14 = arith.constant 0 : index
      %17 = vector.load %arg4[%c0_13, %c0_14] : memref<8x128xf32, #tpu.memory_space<vmem>>, vector<8x128xf32>
      tpu.vector_store %arg4[%c0_13, %c0_14], %16 {strides = array<i32>} : memref<8x128xf32, #tpu.memory_space<vmem>>, vector<8x128xf32>,
      %cst_15 = arith.constant 0.000000e+00 : f32
      %18 = vector.broadcast %cst_15 : f32 to vector<8x128xf32>
      %c0_16 = arith.constant 0 : index
      %c0_17 = arith.constant 0 : index
      %19 = vector.load %arg5[%c0_16, %c0_17] : memref<8x128xf32, #tpu.memory_space<vmem>>, vector<8x128xf32>
      tpu.vector_store %arg5[%c0_16, %c0_17], %18 {strides = array<i32>} : memref<8x128xf32, #tpu.memory_space<vmem>>, vector<8x128xf32>,
    } else {
    }
    %c0 = arith.constant 0 : index
    %c0_1 = arith.constant 0 : index
    %3 = vector.load %arg2[%c0, %c0_1] : memref<8x256xf32, #tpu.memory_space<vmem>>, vector<8x128xf32>
    %c0_2 = arith.constant 0 : index
    %c128 = arith.constant 128 : index
    %4 = vector.load %arg2[%c0_2, %c128] : memref<8x256xf32, #tpu.memory_space<vmem>>, vector<8x128xf32>
    %5 = arith.maximumf %3, %4 : vector<8x128xf32>
    %6 = arith.addf %3, %4 : vector<8x128xf32>
    %c0_3 = arith.constant 0 : index
    %c0_4 = arith.constant 0 : index
    %7 = vector.load %arg4[%c0_3, %c0_4] : memref<8x128xf32, #tpu.memory_space<vmem>>, vector<8x128xf32>
    %8 = arith.maximumf %7, %5 : vector<8x128xf32>
    %c0_5 = arith.constant 0 : index
    %c0_6 = arith.constant 0 : index
    %9 = vector.load %arg4[%c0_5, %c0_6] : memref<8x128xf32, #tpu.memory_space<vmem>>, vector<8x128xf32>
    tpu.vector_store %arg4[%c0_5, %c0_6], %8 {strides = array<i32>} : memref<8x128xf32, #tpu.memory_space<vmem>>, vector<8x128xf32>,
    %c0_7 = arith.constant 0 : index
    %c0_8 = arith.constant 0 : index
    %10 = vector.load %arg5[%c0_7, %c0_8] : memref<8x128xf32, #tpu.memory_space<vmem>>, vector<8x128xf32>
    %11 = arith.addf %10, %6 : vector<8x128xf32>
    %c0_9 = arith.constant 0 : index
    %c0_10 = arith.constant 0 : index
    %12 = vector.load %arg5[%c0_9, %c0_10] : memref<8x128xf32, #tpu.memory_space<vmem>>, vector<8x128xf32>
    tpu.vector_store %arg5[%c0_9, %c0_10], %11 {strides = array<i32>} : memref<8x128xf32, #tpu.memory_space<vmem>>, vector<8x128xf32>,
    %c0_i32_11 = arith.constant 0 : i32
    %13 = arith.cmpi eq, %arg1, %c0_i32_11 : i32
    %14 = arith.extui %13 : i1 to i32
    %c0_i32_12 = arith.constant 0 : i32
    %15 = arith.cmpi ne, %14, %c0_i32_12 : i32
    scf.if %15 {
      %c0_13 = arith.constant 0 : index
      %c0_14 = arith.constant 0 : index
      %16 = vector.load %arg4[%c0_13, %c0_14] : memref<8x128xf32, #tpu.memory_space<vmem>>, vector<8x128xf32>
      %cst = arith.constant dense<0xFF800000> : vector<8xf32>
      %17 = vector.multi_reduction <maximumf>, %16, %cst [1] : vector<8x128xf32> to vector<8xf32>
      %18 = vector.shape_cast %17 : vector<8xf32> to vector<8x1xf32>
      %c0_15 = arith.constant 0 : index
      %c0_16 = arith.constant 0 : index
      %19 = vector.load %arg5[%c0_15, %c0_16] : memref<8x128xf32, #tpu.memory_space<vmem>>, vector<8x128xf32>
      %cst_17 = arith.constant dense<0.000000e+00> : vector<8xf32>
      %20 = vector.multi_reduction <add>, %19, %cst_17 [1] : vector<8x128xf32> to vector<8xf32>
      %21 = vector.shape_cast %20 : vector<8xf32> to vector<8x1xf32>
      %c0_18 = arith.constant 0 : index
      %c0_19 = arith.constant 0 : index
      %22 = vector.load %arg3[%c0_18, %c0_19] : memref<8x2xf32, #tpu.memory_space<vmem>>, vector<8x1xf32>
      tpu.vector_store %arg3[%c0_18, %c0_19], %18 {strides = array<i32>} : memref<8x2xf32, #tpu.memory_space<vmem>>, vector<8x1xf32>,
      %cst_20 = arith.constant 3.906250e-03 : f32
      %23 = vector.broadcast %cst_20 : f32 to vector<8x1xf32>
      %24 = arith.mulf %21, %23 : vector<8x1xf32>
      %c0_21 = arith.constant 0 : index
      %c1 = arith.constant 1 : index
      %25 = vector.load %arg3[%c0_21, %c1] : memref<8x2xf32, #tpu.memory_space<vmem>>, vector<8x1xf32>
      tpu.vector_store %arg3[%c0_21, %c1], %24 {strides = array<i32>} : memref<8x2xf32, #tpu.memory_space<vmem>>, vector<8x1xf32>,
    } else {
    }
    return
  }
  func.func @transform_0(%arg0: i32, %arg1: i32) -> (i32, i32) {
    %c0_i32 = arith.constant 0 : i32
    return %arg0, %arg1 : i32, i32
  }
  func.func @transform_1(%arg0: i32, %arg1: i32) -> (i32, i32) {
    %c0_i32 = arith.constant 0 : i32
    %c0_i32_0 = arith.constant 0 : i32
    return %arg0, %c0_i32 : i32, i32
  }
}

</mosaic_0001>

<bundles_post_ra>
// kernel: tpu_custom_call.1
= control target key start
LH: loop header
LB: loop body
LE: loop exit
PB: predicated region body
PF: predicated region fallthrough
CT: control target
= control target key end

     0   :  { %6 = vsyncpa [#allocation5], 0  ;;  %s78_s6 = smov [#allocation4]   ;;  %s98_s0 = inlined_call_operand.hbm [shape: f32[8,256], index: 0, kind: input, shape index: {}]   ;;  %s99_s1 = inlined_call_operand.vmem [shape: f32[8,2], index: 1, kind: output, shape index: {}]  }
   0x1   :  { %s13_s7 = sshll.u32 %s78_s6, 4  ;;  %s14_s7 = int_to_ptr.vmem [resolvable:$true] %s13_s7 }
   0x2   :  { %s64_s8 = scalar_lea.vmem %s14_s7, 256  ;;  %p69_p1 = scmp.lt.s32.totalorder %s14_s7, %s14_s7 }
   0x3   :  { %p65_p0 = scmp.ne.s32.totalorder %s14_s7, %s64_s8  ;;  %p70_p2 = scmp.lt.s32.totalorder %s64_s8, %s64_s8 }
   0x5   :  { %p71_p3 = por %p70_p2, %p69_p1 }
   0x7   :  { %p72_p4 = pnand %p71_p3, %p65_p0 }
   0x9   :  { %75 = shalt.err (!%p72_p4)
}
   0xa   :  { %16 = dma.hbm_to_vmem [thread:$0]  %s98_s0, 256, %s14_s7, [#allocation5]  }
   0xb   :  { %76 = dma.done.wait [#allocation5], 256  }
   0xc   :  { %77 = vsyncadd [#allocation5], 4294967040  ;;  %v26_v0 = vld [vmem:[#allocation4] sm:$0xff]  ;;  %v27_v1 = vld [vmem:[#allocation4 + $0x8] sm:$0xff]  ;;  %vm45_vm0 = vcmask 7168   ;;  %vm48_vm1 = vcmask 15368  }
   0xd   :  { %v29_v2 = vadd.f32 %v27_v1, %v26_v0  ;;  %v28_v3 = vmax.f32 %v26_v0, %v27_v1 }
   0xf   :  { %43 = vadd.xlane.f32.xlu0 %v29_v2 }
  0x13   :  { %40 = vmax.xlane.f32.xlu0 %v28_v3 }
  0x98   :  { %v44_v4 = vpop.xlane.xlu0 %43 }
  0x99   :  { %v47_v5 = vmul.f32 0.00390625, %v44_v4 }
  0x9c   :  { %v41_v6 = vpop.xlane.xlu0 %40 }
  0x9d   :  { %46 = vst.msk [vmem:[%s99_s1] sm:$0xff] %vm45_vm0, %v41_v6 }
  0x9e   :  { %49 = vst.msk [vmem:[%s99_s1] sm:$0xff] %vm48_vm1, %v47_v5 }
  0x9f   :  { %54 = vsyncpa [#allocation5], 1 }

</bundles_post_ra>
